<compile_context>
chip_gen: v5e
topology: v5e:2x2
jax: 0.10.0
libtpu: 0.0.40
codegen_flags: <defaults>
</compile_context>

<pallas_src>
import functools

import jax
import jax.numpy as jnp
import numpy as np
from jax.experimental import pallas as pl
from jax.experimental.pallas import tpu as pltpu


def _round_up(x, m):
    return ((x + m - 1) // m) * m


def _fast_recip(x):
    """EUP approximate reciprocal + one Newton step (~2^-24 relative error)."""
    r = pl.reciprocal(x, approx=True)
    return r * (2.0 - x * r)


def _diff2d_kernel(x1_ref, x2_ref, out_ref, acc_ref, *, inv_total):
    # x1_ref / x2_ref blocks: (C, T)  (leading batch/split dim squeezed away).
    j = pl.program_id(1)

    @pl.when(j == 0)
    def _():
        acc_ref[...] = jnp.zeros_like(acc_ref)

    x1 = x1_ref[...].astype(jnp.float32)          # (C, T)
    x2 = x2_ref[...].astype(jnp.float32)          # (C, T)

    # Channel softmax without a full (C, T) divide: exp, then a row-only
    # reciprocal of the per-pixel partition function, then multiply.
    e1 = jnp.exp(x1 - jnp.max(x1, axis=0, keepdims=True))
    r1 = _fast_recip(jnp.sum(e1, axis=0, keepdims=True))   # (1, T)
    e2 = jnp.exp(x2 - jnp.max(x2, axis=0, keepdims=True))
    r2 = _fast_recip(jnp.sum(e2, axis=0, keepdims=True))   # (1, T)

    diff = jnp.abs(e1 * r1 - e2 * r2)             # (C, T)

    # Hot loop: channel (sublane) reduce only.  The cross-lane reduce to a
    # scalar is deferred to the last tile of this image chunk.
    acc_ref[...] += jnp.sum(diff, axis=0, keepdims=True)   # (1, T)

    # Emit the (already 1/(N*C*H*W)-scaled) partial on the last tile.
    @pl.when(j == pl.num_programs(1) - 1)
    def _():
        out_ref[...] = (jnp.sum(acc_ref[...], keepdims=True)
                        * jnp.float32(inv_total))


def _plan_tiles(hw, c, itemsize, max_tile, input_budget_bytes=24 << 20):
    """Choose (tile_T, n_tiles, hw_padded, spatial_splits).

    T is the largest multiple of 128 so that 2 inputs x 2 buffers x C x T x
    itemsize fits `input_budget_bytes`, additionally capped at `max_tile`
    lanes.  The flattened spatial axis is padded up to n_tiles * T.  When more
    than one tile is needed, the tile count is rounded up to an even number so
    the tile range can be split 2-way across the parallel grid axis (v7x's two
    TensorCores); the recomputed T keeps the extra padding below 128*n_tiles.
    """
    cap = input_budget_bytes // (4 * c * itemsize)
    cap = min(cap, max_tile)
    cap = max(128, (cap // 128) * 128)

    hw128 = _round_up(hw, 128)
    n_tiles = -(-hw128 // cap)
    splits = 1
    if n_tiles > 1:
        cand = _round_up(n_tiles, 2)
        if cand <= hw128 // 128:            # keep T >= 128
            n_tiles = cand
            splits = 2
    t = _round_up(-(-hw128 // n_tiles), 128)
    hw_pad = n_tiles * t
    return t, n_tiles, hw_pad, splits


def diff2d(inputs1, inputs2, *, max_tile=65536):
    """inputs1, inputs2: (N, C, H, W) logits -> scalar mean(|softmax1 - softmax2|)."""
    assert inputs1.shape == inputs2.shape, "Diff2d expects matching shapes"
    N, C, H, W = inputs1.shape
    hw = H * W
    itemsize = jnp.dtype(inputs1.dtype).itemsize
    t, n_tiles, hw_pad, splits = _plan_tiles(hw, C, itemsize, max_tile)
    tiles_per_split = n_tiles // splits

    # Keep native dtype on the DMA path (bf16 logits stay bf16); cast in-kernel.
    x1 = inputs1.reshape(N, C, hw)
    x2 = inputs2.reshape(N, C, hw)
    if hw_pad != hw:
        # Identical zero padding in both inputs -> identical padded softmax
        # columns -> zero |diff| contribution from the padded pixels.
        pad = ((0, 0), (0, 0), (0, hw_pad - hw))
        x1 = jnp.pad(x1, pad)
        x2 = jnp.pad(x2, pad)

    inv_total = 1.0 / float(N * C * hw)           # true element count, not padded
    kernel = functools.partial(_diff2d_kernel, inv_total=inv_total)

    if splits == 1:
        in_map = lambda i, j: (i, 0, j)
    else:
        in_map = lambda i, j: (i // splits, 0, (i % splits) * tiles_per_split + j)
    in_spec = pl.BlockSpec((pl.Squeezed(), C, t), in_map)

    # Double-buffered inputs + wide accumulator + headroom.  Floor at the
    # v6e/v7x default of 32 MiB (so this only raises v5e's 16 MiB default) and
    # cap below v7x's 64 MiB of physical VMEM.
    vmem_needed = 2 * 2 * C * t * itemsize + 4 * t + (4 << 20)
    vmem_limit = int(min(max(vmem_needed, 32 << 20), 48 << 20))

    cost = pl.CostEstimate(
        flops=int(12 * N * C * hw_pad),
        transcendentals=int(2 * N * C * hw_pad),
        bytes_accessed=int(2 * N * C * hw_pad * itemsize + N * splits * 4),
    )

    partials = pl.pallas_call(
        kernel,
        out_shape=jax.ShapeDtypeStruct((N * splits, 1, 1), jnp.float32),
        grid_spec=pltpu.PrefetchScalarGridSpec(
            num_scalar_prefetch=0,
            grid=(N * splits, tiles_per_split),
            in_specs=[in_spec, in_spec],
            out_specs=pl.BlockSpec((pl.Squeezed(), 1, 1), lambda i, j: (i, 0, 0)),
            scratch_shapes=[pltpu.VMEM((1, t), jnp.float32)],
        ),
        compiler_params=pltpu.CompilerParams(
            dimension_semantics=("parallel", "arbitrary"),
            vmem_limit_bytes=vmem_limit),
        cost_estimate=cost,
    )(x1, x2)

    # Each partial is already scaled by 1/(N*C*H*W); final reduce here.
    return jnp.sum(partials)


def _reference_loss(x1, x2):
    """Pure-JAX reference matching the PyTorch module (softmax over dim=1)."""
    p1 = jax.nn.softmax(x1.astype(jnp.float32), axis=1)
    p2 = jax.nn.softmax(x2.astype(jnp.float32), axis=1)
    return jnp.mean(jnp.abs(p1 - p2))


if __name__ == "__main__":
    key = jax.random.PRNGKey(0)
    k1, k2, k3, k4, k5, k6 = jax.random.split(key, 6)

    # 1) Small NCHW logits; single-tile path.
    a1 = jax.random.normal(k1, (2, 4, 16, 16), dtype=jnp.float32)
    a2 = jax.random.normal(k2, (2, 4, 16, 16), dtype=jnp.float32)
    out = diff2d(a1, a2)
    jax.block_until_ready(out)
    np.testing.assert_allclose(np.asarray(out), np.asarray(_reference_loss(a1, a2)),
                               rtol=1e-4, atol=1e-6)

    # 2) Multi-tile path with the 2-way spatial split on the parallel axis.
    b1 = jax.random.normal(k3, (2, 4, 32, 32), dtype=jnp.float32)
    b2 = jax.random.normal(k4, (2, 4, 32, 32), dtype=jnp.float32)
    out2 = diff2d(b1, b2, max_tile=256)
    jax.block_until_ready(out2)
    np.testing.assert_allclose(np.asarray(out2), np.asarray(_reference_loss(b1, b2)),
                               rtol=1e-4, atol=1e-6)

    # 3) Non-128-multiple spatial size: padded path, odd tile count, odd C.
    c1 = jax.random.normal(k5, (1, 5, 18, 18), dtype=jnp.float32)
    c2 = jax.random.normal(k6, (1, 5, 18, 18), dtype=jnp.float32)
    out3 = diff2d(c1, c2, max_tile=128)
    jax.block_until_ready(out3)
    np.testing.assert_allclose(np.asarray(out3), np.asarray(_reference_loss(c1, c2)),
                               rtol=1e-4, atol=1e-6)

    # 4) bf16 logits: native-dtype DMA, in-kernel f32 compute.
    d1 = a1.astype(jnp.bfloat16)
    d2 = a2.astype(jnp.bfloat16)
    out4 = diff2d(d1, d2)
    jax.block_until_ready(out4)
    np.testing.assert_allclose(np.asarray(out4), np.asarray(_reference_loss(d1, d2)),
                               rtol=1e-4, atol=1e-6)

    print("KERNEL_OK")
</pallas_src>

<mosaic_0001>
module attributes {stable_mosaic.version = 11 : i64} {
  func.func @_diff2d_kernel(%arg0: i32, %arg1: i32, %arg2: memref<1x4x256xf32, #tpu.memory_space<vmem>>, %arg3: memref<1x4x256xf32, #tpu.memory_space<vmem>>, %arg4: memref<1x1x1xf32, #tpu.memory_space<vmem>>, %arg5: memref<1x256xf32, #tpu.memory_space<vmem>>) attributes {dimension_semantics = [#tpu.dimension_semantics<parallel>, #tpu.dimension_semantics<arbitrary>], iteration_bounds = array<i64: 2, 1>, scalar_prefetch = 0 : i64, scratch_operands = 1 : i64, tpu.core_type = #tpu.core_type<tc>, window_params = [{transform_indices = @transform_0, window_bounds = array<i64: 1, 4, 256>}, {transform_indices = @transform_1, window_bounds = array<i64: 1, 4, 256>}, {transform_indices = @transform_2, window_bounds = array<i64: 1, 1, 1>}]} {
    %c0_i32 = arith.constant 0 : i32
    %0 = arith.cmpi eq, %arg1, %c0_i32 : i32
    %1 = arith.extui %0 : i1 to i32
    %c0_i32_0 = arith.constant 0 : i32
    %2 = arith.cmpi ne, %1, %c0_i32_0 : i32
    scf.if %2 {
      %cst_18 = arith.constant 0.000000e+00 : f32
      %45 = vector.broadcast %cst_18 : f32 to vector<1x256xf32>
      %c0_19 = arith.constant 0 : index
      %c0_20 = arith.constant 0 : index
      %46 = vector.load %arg5[%c0_19, %c0_20] : memref<1x256xf32, #tpu.memory_space<vmem>>, vector<1x256xf32>
      tpu.vector_store %arg5[%c0_19, %c0_20], %45 {strides = array<i32>} : memref<1x256xf32, #tpu.memory_space<vmem>>, vector<1x256xf32>,
    } else {
    }
    %c0 = arith.constant 0 : index
    %c0_1 = arith.constant 0 : index
    %c0_2 = arith.constant 0 : index
    %3 = vector.load %arg2[%c0, %c0_1, %c0_2] : memref<1x4x256xf32, #tpu.memory_space<vmem>>, vector<1x4x256xf32>
    %4 = vector.shape_cast %3 : vector<1x4x256xf32> to vector<4x256xf32>
    %c0_3 = arith.constant 0 : index
    %c0_4 = arith.constant 0 : index
    %c0_5 = arith.constant 0 : index
    %5 = vector.load %arg3[%c0_3, %c0_4, %c0_5] : memref<1x4x256xf32, #tpu.memory_space<vmem>>, vector<1x4x256xf32>
    %6 = vector.shape_cast %5 : vector<1x4x256xf32> to vector<4x256xf32>
    %cst = arith.constant dense<0xFF800000> : vector<256xf32>
    %7 = vector.multi_reduction <maximumf>, %4, %cst [0] : vector<4x256xf32> to vector<256xf32>
    %8 = vector.shape_cast %7 : vector<256xf32> to vector<1x256xf32>
    %9 = vector.broadcast %8 : vector<1x256xf32> to vector<4x256xf32>
    %10 = arith.subf %4, %9 : vector<4x256xf32>
    %11 = math.exp %10 : vector<4x256xf32>
    %cst_6 = arith.constant dense<0.000000e+00> : vector<256xf32>
    %12 = vector.multi_reduction <add>, %11, %cst_6 [0] : vector<4x256xf32> to vector<256xf32>
    %13 = vector.shape_cast %12 : vector<256xf32> to vector<1x256xf32>
    %14 = tpu.reciprocal %13 {approx = true} : vector<1x256xf32> -> vector<1x256xf32>
    %15 = arith.mulf %13, %14 : vector<1x256xf32>
    %cst_7 = arith.constant 2.000000e+00 : f32
    %16 = vector.broadcast %cst_7 : f32 to vector<1x256xf32>
    %17 = arith.subf %16, %15 : vector<1x256xf32>
    %18 = arith.mulf %14, %17 : vector<1x256xf32>
    %cst_8 = arith.constant dense<0xFF800000> : vector<256xf32>
    %19 = vector.multi_reduction <maximumf>, %6, %cst_8 [0] : vector<4x256xf32> to vector<256xf32>
    %20 = vector.shape_cast %19 : vector<256xf32> to vector<1x256xf32>
    %21 = vector.broadcast %20 : vector<1x256xf32> to vector<4x256xf32>
    %22 = arith.subf %6, %21 : vector<4x256xf32>
    %23 = math.exp %22 : vector<4x256xf32>
    %cst_9 = arith.constant dense<0.000000e+00> : vector<256xf32>
    %24 = vector.multi_reduction <add>, %23, %cst_9 [0] : vector<4x256xf32> to vector<256xf32>
    %25 = vector.shape_cast %24 : vector<256xf32> to vector<1x256xf32>
    %26 = tpu.reciprocal %25 {approx = true} : vector<1x256xf32> -> vector<1x256xf32>
    %27 = arith.mulf %25, %26 : vector<1x256xf32>
    %cst_10 = arith.constant 2.000000e+00 : f32
    %28 = vector.broadcast %cst_10 : f32 to vector<1x256xf32>
    %29 = arith.subf %28, %27 : vector<1x256xf32>
    %30 = arith.mulf %26, %29 : vector<1x256xf32>
    %31 = vector.broadcast %18 : vector<1x256xf32> to vector<4x256xf32>
    %32 = arith.mulf %11, %31 : vector<4x256xf32>
    %33 = vector.broadcast %30 : vector<1x256xf32> to vector<4x256xf32>
    %34 = arith.mulf %23, %33 : vector<4x256xf32>
    %35 = arith.subf %32, %34 : vector<4x256xf32>
    %36 = math.absf %35 : vector<4x256xf32>
    %c0_11 = arith.constant 0 : index
    %c0_12 = arith.constant 0 : index
    %37 = vector.load %arg5[%c0_11, %c0_12] : memref<1x256xf32, #tpu.memory_space<vmem>>, vector<1x256xf32>
    %cst_13 = arith.constant dense<0.000000e+00> : vector<256xf32>
    %38 = vector.multi_reduction <add>, %36, %cst_13 [0] : vector<4x256xf32> to vector<256xf32>
    %39 = vector.shape_cast %38 : vector<256xf32> to vector<1x256xf32>
    %40 = arith.addf %37, %39 : vector<1x256xf32>
    %c0_14 = arith.constant 0 : index
    %c0_15 = arith.constant 0 : index
    %41 = vector.load %arg5[%c0_14, %c0_15] : memref<1x256xf32, #tpu.memory_space<vmem>>, vector<1x256xf32>
    tpu.vector_store %arg5[%c0_14, %c0_15], %40 {strides = array<i32>} : memref<1x256xf32, #tpu.memory_space<vmem>>, vector<1x256xf32>,
    %c0_i32_16 = arith.constant 0 : i32
    %42 = arith.cmpi eq, %arg1, %c0_i32_16 : i32
    %43 = arith.extui %42 : i1 to i32
    %c0_i32_17 = arith.constant 0 : i32
    %44 = arith.cmpi ne, %43, %c0_i32_17 : i32
    scf.if %44 {
      %c0_18 = arith.constant 0 : index
      %c0_19 = arith.constant 0 : index
      %45 = vector.load %arg5[%c0_18, %c0_19] : memref<1x256xf32, #tpu.memory_space<vmem>>, vector<1x256xf32>
      %46 = vector.shape_cast %45 : vector<1x256xf32> to vector<1x1x256xf32>
      %cst_20 = arith.constant dense<0.000000e+00> : vector<1xf32>
      %47 = vector.multi_reduction <add>, %46, %cst_20 [1, 2] : vector<1x1x256xf32> to vector<1xf32>
      %48 = vector.shape_cast %47 : vector<1xf32> to vector<1x1x1xf32>
      %49 = vector.extract %48[0, 0, 0] : f32 from vector<1x1x1xf32>
      %50 = vector.broadcast %49 : f32 to vector<1x1xf32>
      %cst_21 = arith.constant 4.8828125E-4 : f32
      %51 = vector.broadcast %cst_21 : f32 to vector<1x1xf32>
      %52 = arith.mulf %50, %51 : vector<1x1xf32>
      %c0_22 = arith.constant 0 : index
      %c0_23 = arith.constant 0 : index
      %c0_24 = arith.constant 0 : index
      %53 = vector.load %arg4[%c0_22, %c0_23, %c0_24] : memref<1x1x1xf32, #tpu.memory_space<vmem>>, vector<1x1x1xf32>
      %54 = vector.shape_cast %53 : vector<1x1x1xf32> to vector<1x1xf32>
      %55 = vector.shape_cast %52 : vector<1x1xf32> to vector<1x1x1xf32>
      tpu.vector_store %arg4[%c0_22, %c0_23, %c0_24], %55 {strides = array<i32>} : memref<1x1x1xf32, #tpu.memory_space<vmem>>, vector<1x1x1xf32>,
    } else {
    }
    return
  }
  func.func @transform_0(%arg0: i32, %arg1: i32) -> (i32, i32, i32) {
    %c0_i32 = arith.constant 0 : i32
    %c0_i32_0 = arith.constant 0 : i32
    return %arg0, %c0_i32, %arg1 : i32, i32, i32
  }
  func.func @transform_1(%arg0: i32, %arg1: i32) -> (i32, i32, i32) {
    %c0_i32 = arith.constant 0 : i32
    %c0_i32_0 = arith.constant 0 : i32
    return %arg0, %c0_i32, %arg1 : i32, i32, i32
  }
  func.func @transform_2(%arg0: i32, %arg1: i32) -> (i32, i32, i32) {
    %c0_i32 = arith.constant 0 : i32
    %c0_i32_0 = arith.constant 0 : i32
    %c0_i32_1 = arith.constant 0 : i32
    return %arg0, %c0_i32, %c0_i32_0 : i32, i32, i32
  }
}

</mosaic_0001>

<bundles_post_ra>
// kernel: tpu_custom_call.1
= control target key start
LH: loop header
LB: loop body
LE: loop exit
PB: predicated region body
PF: predicated region fallthrough
CT: control target
= control target key end

     0   :  { %7 = vsyncpa [#allocation4], 0  ;;  %s862_s0 = inlined_call_operand.hbm [shape: f32[2,4,256], index: 0, kind: input, shape index: {}]   ;;  %s863_s1 = inlined_call_operand.hbm [shape: f32[2,4,256], index: 1, kind: input, shape index: {}]   ;;  %s864_s2 = inlined_call_operand.vmem [shape: f32[2,1,1], index: 2, kind: output, shape index: {}]  }
   0x1   :  { %9 = vsyncpa [#allocation4 + $0x1], 0 }
   0x2   :  { %10 = vsyncpa [#allocation6], 0 }
   0x3   :  { %12 = vsyncpa [#allocation6 + $0x1], 0  ;;  %s738_s9 = smov 0   ;;  %s740_s10 = smov 0  }
   0x4   :  { %s742_s11 = smov 0   ;;  %s744_s12 = smov 0  }
   0x5   :  { %s746_s13 = smov 0   ;;  %s748_s14 = smov 0  }
   0x6 LB: > { %s514_s15 = sadd.s32 4294967295, %s720_s14   ;;  %s30_s16 = sadd.s32 1, %s716_s13  ;;  %s720_s14 = sphi %s748_s14, %s18_s14   ;;  %s716_s13 = sphi %s746_s13, %s873_s13   ;;  %s712_s12 = sphi %s744_s12, %s872_s12   ;;  %s708_s11 = sphi %s742_s11, %s871_s11   ;;  %s704_s10 = sphi %s740_s10, %s870_s10   ;;  %s700_s9 = sphi %s738_s9, %s869_s9  }
   0x7   : > { %p32_p0 = scmp.ge.s32.totalorder %s30_s16, 2  ;;  %s39_s17 = sadd.s32 1, %s708_s11 }
   0x8   : > { %p46_p1 = scmp.ne.s32.totalorder %s708_s11, %s704_s10  ;;  %p47_p2 = scmp.eq.s32.totalorder %s720_s14, 0 }
   0x9   : > { %s875_s16 = smov (%p32_p0, %s30_s16), 0  ;;  %p52_p4 = scmp.ne.s32.totalorder %s704_s10, %s700_s9 }
   0xa   : > { %p774_p3 = por %p47_p2, %p46_p1  ;;  %s34_s19 = ssub.s32 %s716_s13, %s875_s16 }
   0xb   : > { %p53_p5 = scmp.eq.s32.totalorder %s514_s15, 0  ;;  %p37_p6 = scmp.eq.s32.totalorder %s34_s19, 0 }
   0xc   : > { %p544_p8 = scmp.lt.s32.totalorder %s720_s14, 2  ;;  %s130_s22 = sand.u32 1, %s708_s11  }
   0xd   : > { %p781_p7 = por %p53_p5, %p52_p4  ;;  %s529_s23 = sshll.u32 %s716_s13, 3 }
   0xe   : > { %s787_s21 = scalar_select %p37_p6, %s708_s11, %s39_s17  }
   0xf   : > { %s518_s24 = sshll.u32 %s130_s22, 3  ;;  %s141_s27 = scalar_lea.hbm %s862_s0, %s529_s23 }
  0x10   : > { %s143_s28 = sshll.u32 %s141_s27, 4  ;;  %s134_s29 = scalar_lea.vmem [#allocation3], %s518_s24  ;;  %s144_s28 = int_to_ptr.hbm [resolvable:$true] %s143_s28 }
  0x11   : > { %s145_s30 = sshll.u32 %s134_s29, 4  ;;  %p538_p9 = pnand %p544_p8, %p774_p3  ;;  %s146_s30 = int_to_ptr.vmem [resolvable:$true] %s145_s30 }
  0x12   : > { %p524_p10 = scmp.ge.s32.totalorder %s720_s14, 1  ;;  %p172_p11 = scmp.lt.s32.totalorder %s720_s14, 3 }
  0x13   : > { %s131_s3 = scalar_lea.sflag [#allocation4], %s130_s22  ;;  %s163_s6 = scalar_lea.hbm %s863_s1, %s529_s23 }
  0x14   : > { %540 = dma.hbm_to_vmem [thread:$0]  (!%p538_p9), %s144_s28, 128, %s146_s30, %s131_s3  }
  0x15   : > { %p173_p12 = pnand %p524_p10, %p172_p11  ;;  %s165_s7 = sshll.u32 %s163_s6, 4  ;;  %s166_s7 = int_to_ptr.hbm [resolvable:$true] %s165_s7 }
  0x16   : > { %s156_s8 = scalar_lea.vmem [#allocation5], %s518_s24  ;;  %s153_s15 = scalar_lea.sflag [#allocation6], %s130_s22 }
  0x17   : > { %s167_s9 = sshll.u32 %s156_s8, 4  ;;  %176 = sbr.rel (%p173_p12) target bundleno = 375 (0x177), region = 28  ;;  %s168_s9 = int_to_ptr.vmem [resolvable:$true] %s167_s9 }
  0x18   : > { %543 = dma.hbm_to_vmem [thread:$0]  (!%p538_p9), %s166_s7, 128, %s168_s9, %s153_s15  }
  0x19   : > { %s178_s17 = sand.u32 (!%p173_p12), 1, %s704_s10  }
  0x1a   : > { %s525_s18 = sshll.u32 (!%p173_p12), %s178_s17, 3  ;;  %s179_s19 = scalar_lea.sflag (!%p173_p12), [#allocation4], %s178_s17 }
  0x1b   : > { %s182_s25 = scalar_lea.vmem (!%p173_p12), [#allocation3], %s525_s18 }
  0x1c   : > { %691 = dma.done.wait (%p781_p7), %s179_s19, 128  }
  0x1d   : > { %693 = vsyncadd (%p781_p7), %s179_s19, 4294967168  ;;  %s189_s23 = scalar_lea.sflag [#allocation6], %s178_s17  ;;  %s806_s24 = scalar_lea.vmem [#allocation5], %s525_s18 }
  0x1e   : > { %695 = dma.done.wait (%p781_p7), %s189_s23, 128  }
  0x1f   : > { %697 = vsyncadd (%p781_p7), %s189_s23, 4294967168  ;;  %v226_v0 = vlaneseq  ;;  %v722_v2 = vmov 0.0   ;;  %v231_v3 = vld [vmem:[%s182_s25] sm:$0xff]  ;;  %vm239_vm1 = vcmask 1043456   ;;  %v232_v25 = vld [vmem:[%s806_s24] sm:$0xff]  ;;  %vm384_vm2 = vcmask 1040384  }
  0x20   : > { %234 = vst [vmem:[#allocation1] ss:$2 sm:$0xff] %v231_v3  ;;  %p219_p13 = scmp.lt.s32.totalorder %s712_s12, 1  ;;  %vm416_vm3 = vcmask 0  }
  0x21   : > { %vm812_vm0 = vcmp.lt.s32.totalorder %v226_v0, 256 }
  0x22   : > { %230 = vst.msk [vmem:[#allocation2] sm:$0x3] %vm812_vm0, %v722_v2  ;;  %s877_s12 = smov (!%p219_p13, %s712_s12), 1 }
  0x23   : > { %s221_s27 = scalar_lea.vmem %s864_s2, %s877_s12 }
  0x27   : > { %v235_v4 = vld.sshfl [vmem:[#allocation1] sm:$0xff pattern:$0x75316420]  ;;  %v236_v5 = vld.sshfl [vmem:[#allocation1 + $0x8] sm:$0xff pattern:$0x75316420] }
  0x28   : > { %v240_v6 = vsel %vm239_vm1, %v235_v4, -inf  ;;  %v247_v7 = vsel %vm239_vm1, %v236_v5, -inf }
  0x29   : > { %v241_v8 = vrot.slane %v240_v6, 4  ;;  %v248_v9 = vrot.slane %v247_v7, 4 }
  0x2b   : > { %v242_v10 = vmax.f32 %v240_v6, %v241_v8  ;;  %v249_v11 = vmax.f32 %v247_v7, %v248_v9 }
  0x2d   : > { %v243_v12 = vrot.slane %v242_v10, 2  ;;  %v250_v13 = vrot.slane %v249_v11, 2 }
  0x2f   : > { %v244_v14 = vmax.f32 %v242_v10, %v243_v12  ;;  %v251_v15 = vmax.f32 %v249_v11, %v250_v13 }
  0x31   : > { %v245_v16 = vrot.slane %v244_v14, 1  ;;  %v252_v17 = vrot.slane %v251_v15, 1 }
  0x33   : > { %v246_v18 = vmax.f32 %v244_v14, %v245_v16  ;;  %v253_v19 = vmax.f32 %v251_v15, %v252_v17 }
  0x35   : > { %v256_v20 = vrot.slane %v253_v19, 4 }
  0x37   : > { %v257_v21 = vsel %vm239_vm1, %v246_v18, %v256_v20 }
  0x38   : > { %v259_v22 = vsub.f32 %v231_v3, %v257_v21 }
  0x3a   : > { %v260_v23 = vmul.f32 1.442695, %v259_v22 }
  0x3c   : > { %594 = vpow2.f32 %v260_v23 }
  0x42   : > { %v821_v24 = vpop.eup %594 }
  0x43   : > { %263 = vst [vmem:[#allocation1] ss:$2 sm:$0xff] %v821_v24 }
  0x4a   : > { %v264_v26 = vld.sshfl [vmem:[#allocation1] sm:$0xff pattern:$0x75316420]  ;;  %v265_v27 = vld.sshfl [vmem:[#allocation1 + $0x8] sm:$0xff pattern:$0x75316420] }
  0x4b   : > { %291 = vst [vmem:[#allocation1] ss:$2 sm:$0xff] %v232_v25  ;;  %v275_v40 = vsel %vm239_vm1, %v265_v27, 0.0  ;;  %v268_v46 = vsel %vm239_vm1, %v264_v26, 0.0 }
  0x4c   : > { %v276_v43 = vrot.slane %v275_v40, 4  ;;  %v269_v48 = vrot.slane %v268_v46, 4 }
  0x4e   : > { %v277_v49 = vadd.f32 %v276_v43, %v275_v40  ;;  %v270_v53 = vadd.f32 %v269_v48, %v268_v46 }
  0x50   : > { %v278_v54 = vrot.slane %v277_v49, 2  ;;  %v271_v55 = vrot.slane %v270_v53, 2 }
  0x52   : > { %v292_v28 = vld.sshfl [vmem:[#allocation1] sm:$0xff pattern:$0x75316420]  ;;  %v293_v29 = vld.sshfl [vmem:[#allocation1 + $0x8] sm:$0xff pattern:$0x75316420]  ;;  %v279_v56 = vadd.f32 %v278_v54, %v277_v49  ;;  %v272_v58 = vadd.f32 %v271_v55, %v270_v53 }
  0x53   : > { %v296_v30 = vsel %vm239_vm1, %v292_v28, -inf  ;;  %v303_v31 = vsel %vm239_vm1, %v293_v29, -inf }
  0x54   : > { %v297_v32 = vrot.slane %v296_v30, 4  ;;  %v304_v33 = vrot.slane %v303_v31, 4  ;;  %v280_v59 = vrot.slane %v279_v56, 1  ;;  %v273_v60 = vrot.slane %v272_v58, 1 }
  0x56   : > { %v298_v34 = vmax.f32 %v296_v30, %v297_v32  ;;  %v305_v35 = vmax.f32 %v303_v31, %v304_v33  ;;  %v281_v61 = vadd.f32 %v280_v59, %v279_v56  ;;  %v274_v0 = vadd.f32 %v273_v60, %v272_v58  ;;  %v360_v56 = vld [vmem:[#allocation2] sm:$0x3] }
  0x58   : > { %v299_v36 = vrot.slane %v298_v34, 2  ;;  %v306_v37 = vrot.slane %v305_v35, 2 }
  0x5a   : > { %v300_v38 = vmax.f32 %v298_v34, %v299_v36  ;;  %v307_v39 = vmax.f32 %v305_v35, %v306_v37 }
  0x5c   : > { %v301_v41 = vrot.slane %v300_v38, 1  ;;  %v308_v42 = vrot.slane %v307_v39, 1 }
  0x5e   : > { %v302_v44 = vmax.f32 %v300_v38, %v301_v41  ;;  %v309_v45 = vmax.f32 %v307_v39, %v308_v42 }
  0x60   : > { %v312_v47 = vrot.slane %v309_v45, 4 }
  0x62   : > { %v313_v50 = vsel %vm239_vm1, %v302_v44, %v312_v47 }
  0x63   : > { %v315_v51 = vsub.f32 %v232_v25, %v313_v50 }
  0x65   : > { %v316_v52 = vmul.f32 1.442695, %v315_v51 }
  0x67   : > { %596 = vpow2.f32 %v316_v52 }
  0x68   : > { %598 = vrcp.f32 %v281_v61 }
  0x69   : > { %600 = vrcp.f32 %v274_v0 }
  0x6d   : > { %v597_v57 = vpop.eup %596 }
  0x6e   : > { %319 = vst [vmem:[#allocation1] ss:$2 sm:$0xff] %v597_v57  ;;  %v599_v10 = vpop.eup %598 }
  0x6f   : > { %v285_v13 = vmul.f32 %v599_v10, %v281_v61  ;;  %v601_v16 = vpop.eup %600 }
  0x70   : > { %v284_v19 = vmul.f32 %v601_v16, %v274_v0 }
  0x71   : > { %v287_v20 = vsub.f32 2.0, %v285_v13 }
  0x72   : > { %v286_v21 = vsub.f32 2.0, %v284_v19 }
  0x73   : > { %v289_v22 = vmul.f32 %v599_v10, %v287_v20 }
  0x74   : > { %v288_v27 = vmul.f32 %v601_v16, %v286_v21 }
  0x75   : > { %v320_v62 = vld.sshfl [vmem:[#allocation1] sm:$0xff pattern:$0x75316420]  ;;  %v321_v63 = vld.sshfl [vmem:[#allocation1 + $0x8] sm:$0xff pattern:$0x75316420] }
  0x76   : > { %v324_v2 = vsel %vm239_vm1, %v320_v62, 0.0  ;;  %v331_v3 = vsel %vm239_vm1, %v321_v63, 0.0  ;;  %v348_v29 = vrot.slane %v289_v22, 4 }
  0x77   : > { %v325_v4 = vrot.slane %v324_v2, 4  ;;  %v332_v5 = vrot.slane %v331_v3, 4 }
  0x78   : > { %v349_v34 = vsel %vm239_vm1, %v288_v27, %v348_v29 }
  0x79   : > { %v326_v6 = vadd.f32 %v325_v4, %v324_v2  ;;  %v333_v7 = vadd.f32 %v332_v5, %v331_v3  ;;  %v351_v36 = vmul.f32 %v821_v24, %v349_v34 }
  0x7b   : > { %v327_v8 = vrot.slane %v326_v6, 2  ;;  %v334_v9 = vrot.slane %v333_v7, 2 }
  0x7d   : > { %v328_v11 = vadd.f32 %v327_v8, %v326_v6  ;;  %v335_v12 = vadd.f32 %v334_v9, %v333_v7 }
  0x7f   : > { %v329_v14 = vrot.slane %v328_v11, 1  ;;  %v336_v15 = vrot.slane %v335_v12, 1 }
  0x81   : > { %v330_v17 = vadd.f32 %v329_v14, %v328_v11  ;;  %v337_v18 = vadd.f32 %v336_v15, %v335_v12 }
  0x83   : > { %602 = vrcp.f32 %v330_v17 }
  0x84   : > { %604 = vrcp.f32 %v337_v18 }
  0x89   : > { %v603_v23 = vpop.eup %602 }
  0x8a   : > { %v605_v25 = vpop.eup %604  ;;  %v340_v26 = vmul.f32 %v603_v23, %v330_v17 }
  0x8b   : > { %v341_v28 = vmul.f32 %v605_v25, %v337_v18 }
  0x8c   : > { %v342_v30 = vsub.f32 2.0, %v340_v26 }
  0x8d   : > { %v343_v31 = vsub.f32 2.0, %v341_v28 }
  0x8e   : > { %v344_v32 = vmul.f32 %v603_v23, %v342_v30 }
  0x8f   : > { %v345_v33 = vmul.f32 %v605_v25, %v343_v31 }
  0x91   : > { %v354_v35 = vrot.slane %v345_v33, 4 }
  0x93   : > { %v355_v37 = vsel %vm239_vm1, %v344_v32, %v354_v35 }
  0x94   : > { %v357_v38 = vmul.f32 %v597_v57, %v355_v37 }
  0x96   : > { %v358_v39 = vsub.f32 %v351_v36, %v357_v38 }
  0x98   : > { %v359_v40 = vand.u32 2147483647, %v358_v39 }
  0x9a   : > { %362 = vst [vmem:[#allocation1] ss:$2 sm:$0xff] %v359_v40 }
  0xa1   : > { %v363_v41 = vld.sshfl [vmem:[#allocation1] sm:$0xff pattern:$0x75316420]  ;;  %v364_v42 = vld.sshfl [vmem:[#allocation1 + $0x8] sm:$0xff pattern:$0x75316420] }
  0xa2   : > { %v367_v43 = vsel %vm239_vm1, %v363_v41, 0.0  ;;  %v374_v44 = vsel %vm239_vm1, %v364_v42, 0.0 }
  0xa3   : > { %v368_v45 = vrot.slane %v367_v43, 4  ;;  %v375_v46 = vrot.slane %v374_v44, 4 }
  0xa5   : > { %v369_v47 = vadd.f32 %v368_v45, %v367_v43  ;;  %v376_v48 = vadd.f32 %v375_v46, %v374_v44 }
  0xa7   : > { %v370_v49 = vrot.slane %v369_v47, 2  ;;  %v377_v50 = vrot.slane %v376_v48, 2 }
  0xa9   : > { %v371_v51 = vadd.f32 %v370_v49, %v369_v47  ;;  %v378_v24 = vadd.f32 %v377_v50, %v376_v48 }
  0xab   : > { %v372_v52 = vrot.slane %v371_v51, 1  ;;  %v379_v53 = vrot.slane %v378_v24, 1 }
  0xad   : > { %v373_v54 = vadd.f32 %v372_v52, %v371_v51  ;;  %v380_v55 = vadd.f32 %v379_v53, %v378_v24 }
  0xaf   : > { %v383_v57 = vrot.slane %v380_v55, 7 }
  0xb1   : > { %v385_v58 = vsel %vm384_vm2, %v373_v54, %v383_v57 }
  0xb2   : > { %v387_v59 = vadd.f32 %v385_v58, %v360_v56 }
  0xb4   : > { %392 = vst.msk [vmem:[#allocation2] sm:$0x3] %vm812_vm0, %v387_v59 }
  0xbb   : > { %v396_v60 = vld [vmem:[#allocation2] sm:$0x3] }
  0xbc   : > { %v398_v61 = vperm.slane %v396_v60, 0  ;;  %v399_v62 = vperm.slane %v396_v60, 1 }
  0xbe   : > { %v402_v63 = vsel %vm384_vm2, %v398_v61, 0.0  ;;  %v403_v0 = vsel %vm384_vm2, %v399_v62, 0.0 }
  0xbf   : > { %v404_v2 = vadd.f32 %v403_v0, %v402_v63 }
  0xc1   : > { %405 = vadd.xlane.f32.xlu0 %v404_v2 }
 0x134   : > { %v406_v3 = vpop.xlane.xlu0 %405 }
 0x135   : > { %v407_v4 = vrot.slane %v406_v3, 4 }
 0x137   : > { %v408_v5 = vadd.f32 %v407_v4, %v406_v3 }
 0x139   : > { %v409_v6 = vrot.slane %v408_v5, 2 }
 0x13b   : > { %v410_v7 = vadd.f32 %v409_v6, %v408_v5 }
 0x13d   : > { %v411_v8 = vrot.slane %v410_v7, 1 }
 0x13f   : > { %v412_v9 = vadd.f32 %v411_v8, %v410_v7 }
 0x141   : > { %531 = vpush %v412_v9 }
 0x172   : > { %s532_s20 = spop %531 }
 0x173   : > { %v414_v1 = vstv %s532_s20 }
 0x174   : > { %v415_v10 = vmul.f32 0.00048828125, %v414_v1 }
 0x176   : > { %417 = vst.msk [vmem:[%s221_s27] sm:$0x1] %vm416_vm3, %v415_v10 }
 0x177 PF: > { %s18_s14 = sadd.s32 1, %s720_s14   ;;  %s869_s9 = smov %s704_s10 }
 0x178   : > { %p15_p0 = scmp.ge.s32.totalorder %s18_s14, 4   ;;  %s870_s10 = smov %s708_s11 }
 0x179   : > { %s871_s11 = smov %s787_s21  ;;  %s872_s12 = smov %s716_s13 }
 0x17a   : > { %s873_s13 = smov %s875_s16  ;;  %17 = sbr.rel (!%p15_p0) target bundleno = 6 (0x6), region = 89 }
 0x17f   :  { %435 = vsyncpa [#allocation4], 1 }
 0x180   :  { %437 = vsyncpa [#allocation4 + $0x1], 1 }
 0x181   :  { %438 = vsyncpa [#allocation6], 1 }
 0x182   :  { %440 = vsyncpa [#allocation6 + $0x1], 1 }

</bundles_post_ra>
